<compile_context>
chip_gen: v6e
topology: v6e:2x2x1
jax: 0.10.0
libtpu: 0.0.40
codegen_flags: <defaults>
</compile_context>

<pallas_src>
import jax
import jax.numpy as jnp
from jax.experimental import pallas as pl
from jax.experimental.pallas import tpu as pltpu

_LANE = 128
_MAX_BLOCK_ROWS = 2048  # 2048 x 128 x 4B = 1 MiB per f32 input block


def _make_kernel(block_rows, blocks_per_slice, valid_rows, need_mask):
    def kernel(mu_ref, lv_ref, out_ref):
        i = pl.program_id(1)

        @pl.when(i == 0)
        def _():
            out_ref[...] = jnp.zeros_like(out_ref)

        mu = mu_ref[...].astype(jnp.float32)
        lv = lv_ref[...].astype(jnp.float32)
        # Elementwise hot path on VPU; exp() goes to the EUP slot.
        term = 1.0 + lv - mu * mu - jnp.exp(lv)

        if need_mask:
            # Zero out rows of the (ragged) final block that lie past the
            # end of the array (their VMEM contents are undefined).
            c = pl.program_id(0)
            row0 = (c * blocks_per_slice + i) * block_rows
            local = jax.lax.broadcasted_iota(jnp.int32, term.shape, 0)
            term = jnp.where(row0 + local < valid_rows, term, 0.0)

        # Fold the block into a vreg-shaped (8,128) partial: pure VPU adds,
        # no per-step XLU cross-lane reduction, no masked scalar store.
        partial = term.reshape(block_rows // 8, 8, _LANE).sum(axis=0)
        out_ref[...] += partial

    return kernel


def kld_loss(mu: jax.Array, logvar: jax.Array) -> jax.Array:
    """Pallas implementation of KLDLoss.forward. Returns a scalar f32."""
    assert mu.shape == logvar.shape, "mu/logvar must have the same shape"

    n = mu.size
    if n == 0:
        return jnp.float32(0.0)

    mu_flat = mu.reshape(-1)
    lv_flat = logvar.reshape(-1)

    # Row alignment so block rows are a multiple of the native sublane tile
    # for the input dtype (8 rows for 32-bit, 16 for 16-bit, 32 for 8-bit).
    itemsize = jnp.dtype(mu.dtype).itemsize
    min_rows = {4: 8, 2: 16, 1: 32}.get(itemsize, 8)
    align = min_rows * _LANE

    pad = (-n) % align
    if pad:
        # TODO(synk): rare ragged-tail path still pays one HBM copy for the
        # pad; zero-padding (mu=0, logvar=0) contributes exactly 0 to the sum.
        mu_flat = jnp.pad(mu_flat, (0, pad))
        lv_flat = jnp.pad(lv_flat, (0, pad))

    rows = (n + pad) // _LANE
    mu2d = mu_flat.reshape(rows, _LANE)  # free reshape of contiguous array
    lv2d = lv_flat.reshape(rows, _LANE)

    block_rows = min(_MAX_BLOCK_ROWS, rows)
    num_blocks = (rows + block_rows - 1) // block_rows
    need_mask = (rows % block_rows) != 0

    # Split across the two TensorCores of a v7x chip when the block count
    # splits evenly; degrades to a single slice on small inputs / 1-TC chips.
    num_slices = 2 if (num_blocks >= 2 and num_blocks % 2 == 0) else 1
    blocks_per_slice = num_blocks // num_slices

    kernel = _make_kernel(block_rows, blocks_per_slice, rows, need_mask)

    def in_map(c, i):
        return (c * blocks_per_slice + i, 0)

    partials = pl.pallas_call(
        kernel,
        out_shape=jax.ShapeDtypeStruct((num_slices * 8, _LANE), jnp.float32),
        grid_spec=pltpu.PrefetchScalarGridSpec(
            num_scalar_prefetch=0,
            grid=(num_slices, blocks_per_slice),
            in_specs=[
                pl.BlockSpec((block_rows, _LANE), in_map),
                pl.BlockSpec((block_rows, _LANE), in_map),
            ],
            out_specs=pl.BlockSpec((8, _LANE), lambda c, i: (c, 0)),
        ),
        compiler_params=pltpu.CompilerParams(
            dimension_semantics=("parallel", "arbitrary"),
        ),
    )(mu2d, lv2d)

    # Final cross-lane reduce of <= 2048 floats: negligible, done in XLA.
    return -0.5 * jnp.sum(partials)


def kld_loss_ref(mu, logvar):
    """Pure-JAX reference matching the PyTorch module exactly."""
    mu = mu.astype(jnp.float32)
    logvar = logvar.astype(jnp.float32)
    return -0.5 * jnp.sum(1.0 + logvar - mu * mu - jnp.exp(logvar))


if __name__ == "__main__":
    key = jax.random.PRNGKey(0)
    k_mu, k_lv = jax.random.split(key)

    # Small VAE-latent-style shapes (NCHW convention, as PyTorch would feed).
    shape = (2, 4, 16, 16)
    mu = jax.random.normal(k_mu, shape, dtype=jnp.float32)
    logvar = 0.5 * jax.random.normal(k_lv, shape, dtype=jnp.float32)

    out = jax.block_until_ready(kld_loss(mu, logvar))
    ref = jax.block_until_ready(kld_loss_ref(mu, logvar))

    assert jnp.allclose(out, ref, rtol=1e-5, atol=1e-4), (out, ref)
    print("KERNEL_OK")
</pallas_src>

<mosaic_0001>
module attributes {stable_mosaic.version = 11 : i64} {
  func.func @kernel(%arg0: i32, %arg1: i32, %arg2: memref<16x128xf32, #tpu.memory_space<vmem>>, %arg3: memref<16x128xf32, #tpu.memory_space<vmem>>, %arg4: memref<8x128xf32, #tpu.memory_space<vmem>>) attributes {dimension_semantics = [#tpu.dimension_semantics<parallel>, #tpu.dimension_semantics<arbitrary>], iteration_bounds = array<i64: 1, 1>, scalar_prefetch = 0 : i64, scratch_operands = 0 : i64, tpu.core_type = #tpu.core_type<tc>, window_params = [{transform_indices = @transform_0, window_bounds = array<i64: 16, 128>}, {transform_indices = @transform_1, window_bounds = array<i64: 16, 128>}, {transform_indices = @transform_2, window_bounds = array<i64: 8, 128>}]} {
    %c0_i32 = arith.constant 0 : i32
    %0 = arith.cmpi eq, %arg1, %c0_i32 : i32
    %1 = arith.extui %0 : i1 to i32
    %c0_i32_0 = arith.constant 0 : i32
    %2 = arith.cmpi ne, %1, %c0_i32_0 : i32
    scf.if %2 {
      %cst_9 = arith.constant 0.000000e+00 : f32
      %16 = vector.broadcast %cst_9 : f32 to vector<8x128xf32>
      %c0_10 = arith.constant 0 : index
      %c0_11 = arith.constant 0 : index
      %17 = vector.load %arg4[%c0_10, %c0_11] : memref<8x128xf32, #tpu.memory_space<vmem>>, vector<8x128xf32>
      tpu.vector_store %arg4[%c0_10, %c0_11], %16 {strides = array<i32>} : memref<8x128xf32, #tpu.memory_space<vmem>>, vector<8x128xf32>,
    } else {
    }
    %c0 = arith.constant 0 : index
    %c0_1 = arith.constant 0 : index
    %3 = vector.load %arg2[%c0, %c0_1] : memref<16x128xf32, #tpu.memory_space<vmem>>, vector<16x128xf32>
    %c0_2 = arith.constant 0 : index
    %c0_3 = arith.constant 0 : index
    %4 = vector.load %arg3[%c0_2, %c0_3] : memref<16x128xf32, #tpu.memory_space<vmem>>, vector<16x128xf32>
    %cst = arith.constant 1.000000e+00 : f32
    %5 = vector.broadcast %cst : f32 to vector<16x128xf32>
    %6 = arith.addf %5, %4 : vector<16x128xf32>
    %7 = arith.mulf %3, %3 : vector<16x128xf32>
    %8 = arith.subf %6, %7 : vector<16x128xf32>
    %9 = math.exp %4 : vector<16x128xf32>
    %10 = arith.subf %8, %9 : vector<16x128xf32>
    %11 = vector.shape_cast %10 : vector<16x128xf32> to vector<2x8x128xf32>
    %cst_4 = arith.constant dense<0.000000e+00> : vector<8x128xf32>
    %12 = vector.multi_reduction <add>, %11, %cst_4 [0] : vector<2x8x128xf32> to vector<8x128xf32>
    %c0_5 = arith.constant 0 : index
    %c0_6 = arith.constant 0 : index
    %13 = vector.load %arg4[%c0_5, %c0_6] : memref<8x128xf32, #tpu.memory_space<vmem>>, vector<8x128xf32>
    %14 = arith.addf %13, %12 : vector<8x128xf32>
    %c0_7 = arith.constant 0 : index
    %c0_8 = arith.constant 0 : index
    %15 = vector.load %arg4[%c0_7, %c0_8] : memref<8x128xf32, #tpu.memory_space<vmem>>, vector<8x128xf32>
    tpu.vector_store %arg4[%c0_7, %c0_8], %14 {strides = array<i32>} : memref<8x128xf32, #tpu.memory_space<vmem>>, vector<8x128xf32>,
    return
  }
  func.func @transform_0(%arg0: i32, %arg1: i32) -> (i32, i32) {
    %c1_i32 = arith.constant 1 : i32
    %0 = arith.muli %arg0, %c1_i32 : i32
    %1 = arith.addi %0, %arg1 : i32
    %c0_i32 = arith.constant 0 : i32
    %c0_i32_0 = arith.constant 0 : i32
    return %1, %c0_i32 : i32, i32
  }
  func.func @transform_1(%arg0: i32, %arg1: i32) -> (i32, i32) {
    %c1_i32 = arith.constant 1 : i32
    %0 = arith.muli %arg0, %c1_i32 : i32
    %1 = arith.addi %0, %arg1 : i32
    %c0_i32 = arith.constant 0 : i32
    %c0_i32_0 = arith.constant 0 : i32
    return %1, %c0_i32 : i32, i32
  }
  func.func @transform_2(%arg0: i32, %arg1: i32) -> (i32, i32) {
    %c0_i32 = arith.constant 0 : i32
    %c0_i32_0 = arith.constant 0 : i32
    return %arg0, %c0_i32 : i32, i32
  }
}

</mosaic_0001>

<bundles_post_ra>
// kernel: tpu_custom_call.1
= control target key start
LH: loop header
LB: loop body
LE: loop exit
PB: predicated region body
PF: predicated region fallthrough
CT: control target
= control target key end

     0   :  { %7 = vsyncpa [#allocation3], 0  ;;  %s198_s0 = inlined_call_operand.hbm [shape: f32[16,128], index: 0, kind: input, shape index: {}]   ;;  %s199_s1 = inlined_call_operand.hbm [shape: f32[16,128], index: 1, kind: input, shape index: {}]   ;;  %s200_s2 = inlined_call_operand.hbm [shape: f32[8,128], index: 2, kind: output, shape index: {}]  }
   0x1   :  { %8 = vsyncpa [#allocation6], 0 }
   0x2   :  { %9 = vsyncpa [#allocation4], 0  ;;  %s169_s9 = smov [#allocation2]  }
   0x3   :  { %s19_s10 = sshll.u32 %s169_s9, 4  ;;  %s20_s10 = int_to_ptr.vmem [resolvable:$true] %s19_s10 }
   0x4   :  { %s111_s11 = scalar_lea.vmem %s20_s10, 256  ;;  %p116_p1 = scmp.lt.s32.totalorder %s20_s10, %s20_s10 }
   0x5   :  { %p112_p0 = scmp.ne.s32.totalorder %s20_s10, %s111_s11  ;;  %p117_p2 = scmp.lt.s32.totalorder %s111_s11, %s111_s11 }
   0x7   :  { %p118_p3 = por %p117_p2, %p116_p1 }
   0x9   :  { %p119_p4 = pnand %p118_p3, %p112_p0 }
   0xb   :  { %122 = shalt.err (!%p119_p4)
}
   0xc   :  { %s170_s12 = smov 128   ;;  %s171_s13 = smov 8  }
   0xd   :  { %25 = dma.hbm_to_vmem [thread:$0]  %s198_s0, 256, %s20_s10, [#allocation3], %s170_s12, %s170_s12, %s171_s13  }
   0xe   :  { %s172_s16 = smov [#allocation5]  }
   0xf   :  { %s35_s17 = sshll.u32 %s172_s16, 4  ;;  %s36_s17 = int_to_ptr.vmem [resolvable:$true] %s35_s17 }
  0x10   :  { %s131_s18 = scalar_lea.vmem %s36_s17, 256  ;;  %p136_p6 = scmp.lt.s32.totalorder %s36_s17, %s36_s17 }
  0x11   :  { %p132_p5 = scmp.ne.s32.totalorder %s36_s17, %s131_s18  ;;  %p137_p7 = scmp.lt.s32.totalorder %s131_s18, %s131_s18 }
  0x13   :  { %p138_p8 = por %p137_p7, %p136_p6 }
  0x15   :  { %p139_p9 = pnand %p138_p8, %p132_p5 }
  0x17   :  { %142 = shalt.err (!%p139_p9)
}
  0x18   :  { %41 = dma.hbm_to_vmem [thread:$0]  %s199_s1, 256, %s36_s17, [#allocation6], %s170_s12, %s170_s12, %s171_s13  }
  0x19   :  { %163 = dma.done.wait [#allocation3], 256  }
  0x1a   :  { %164 = vsyncadd [#allocation3], 4294967040 }
  0x1b   :  { %165 = dma.done.wait [#allocation6], 256  }
  0x1c   :  { %166 = vsyncadd [#allocation6], 4294967040  ;;  %v59_v0 = vld [vmem:[#allocation5] sm:$0xff]  ;;  %v60_v1 = vld [vmem:[#allocation5 + $0x8] sm:$0xff]  ;;  %s173_s0 = smov [#allocation7]  }
  0x1d   :  { %v67_v2 = vmul.f32 1.442695, %v59_v0  ;;  %v69_v3 = vmul.f32 1.442695, %v60_v1  ;;  %v57_v4 = vld [vmem:[#allocation2] sm:$0xff]  ;;  %v58_v5 = vld [vmem:[#allocation2 + $0x8] sm:$0xff] }
  0x1e   :  { %v61_v6 = vadd.f32 1.0, %v59_v0  ;;  %v63_v7 = vmul.f32 %v57_v4, %v57_v4  ;;  %v62_v8 = vadd.f32 1.0, %v60_v1  ;;  %v64_v9 = vmul.f32 %v58_v5, %v58_v5  ;;  %s83_s1 = sshll.u32 %s173_s0, 4  ;;  %s84_s1 = int_to_ptr.vmem [resolvable:$true] %s83_s1 }
  0x1f   :  { %99 = vpow2.f32 %v67_v2  ;;  %s143_s21 = scalar_lea.vmem %s84_s1, 128  ;;  %p148_p11 = scmp.lt.s32.totalorder %s84_s1, %s84_s1 }
  0x20   :  { %101 = vpow2.f32 %v69_v3  ;;  %v65_v10 = vsub.f32 %v61_v6, %v63_v7  ;;  %v66_v11 = vsub.f32 %v62_v8, %v64_v9  ;;  %p144_p10 = scmp.ne.s32.totalorder %s84_s1, %s143_s21  ;;  %p149_p12 = scmp.lt.s32.totalorder %s143_s21, %s143_s21 }
  0x22   :  { %p150_p13 = por %p149_p12, %p148_p11 }
  0x24   :  { %p151_p0 = pnand %p150_p13, %p144_p10 }
  0x2c   :  { %v100_v12 = vpop.eup %99 }
  0x2d   :  { %v102_v13 = vpop.eup %101  ;;  %v71_v14 = vsub.f32 %v65_v10, %v100_v12 }
  0x2e   :  { %v72_v15 = vsub.f32 %v66_v11, %v102_v13 }
  0x30   :  { %v73_v16 = vadd.f32 %v72_v15, %v71_v14 }
  0x32   :  { %76 = vst [vmem:[#allocation7] sm:$0xff] %v73_v16 }
  0x33   :  { %154 = shalt.err (!%p151_p0)
}
  0x34   :  { %86 = dma.vmem_to_hbm [thread:$0]  %s84_s1, 128, %s200_s2, [#allocation4]  }
  0x35   :  { %167 = dma.done.wait [#allocation4], 128  }
  0x36   :  { %168 = vsyncadd [#allocation4], 4294967168 }
  0x37   :  { %90 = vsyncpa [#allocation3], 1 }
  0x38   :  { %91 = vsyncpa [#allocation6], 1 }
  0x39   :  { %92 = vsyncpa [#allocation4], 1 }

</bundles_post_ra>
